<compile_context>
chip_gen: v6e
topology: v6e:2x2x1
jax: 0.10.0
libtpu: 0.0.40
codegen_flags: <defaults>
</compile_context>

<pallas_src>
import functools

import jax
import jax.numpy as jnp
from jax.experimental import pallas as pl
from jax.experimental.pallas import tpu as pltpu


def relation_kernel(x_ref, w1_ref, sh1_ref, w2_ref, sh2_ref,
                    wf1_ref, bf1_ref, wf2_ref, bf2_ref, out_ref, *, C, L):
    """All operands are (rows, TB): features on sublanes, batch tile on lanes."""
    f32, bf16 = jnp.float32, jnp.bfloat16
    TB = x_ref.shape[1]
    L2, L3 = L // 2, L // 4

    # layer1: Conv1d(2C->C, k=3, pad=1) + BN + ReLU.  Taps, zero padding and BN scale
    # are pre-folded into w1, so this is one MXU matmul with N = lane-dense TB.
    a1 = jnp.dot(w1_ref[...], x_ref[...], preferred_element_type=f32)        # (L*C, TB)
    a1 = jnp.maximum(a1 + sh1_ref[...], 0.0)
    # MaxPool1d(2): rows are position-major (l*C + c); the split at 2C (=16) and the
    # C (=8) slices are sublane-tile aligned, so this is a free reshape + vreg max.
    p1 = a1.reshape(L2, 2 * C, TB)
    y1 = jnp.maximum(p1[:, :C, :], p1[:, C:, :]).reshape(L2 * C, TB).astype(bf16)

    # layer2: Conv1d(C->C, k=3, pad=1) + BN + ReLU, same folding.
    a2 = jnp.dot(w2_ref[...], y1, preferred_element_type=f32)                # (L2*C, TB)
    a2 = jnp.maximum(a2 + sh2_ref[...], 0.0)
    p2 = a2.reshape(L3, 2 * C, TB)
    y2 = jnp.maximum(p2[:, :C, :], p2[:, C:, :]).reshape(L3 * C, TB).astype(bf16)

    # fc1 + ReLU (wf1 columns pre-permuted to match PyTorch's channel-major .view()).
    h = jnp.dot(wf1_ref[...], y2, preferred_element_type=f32) + bf1_ref[...]  # (H, TB)
    h = jnp.maximum(h, 0.0).astype(bf16)

    # fc2 + sigmoid, emitted lane-dense as a (1, TB) row.
    logit = jnp.dot(wf2_ref[...], h, preferred_element_type=f32) + bf2_ref[...]
    out_ref[...] = jax.nn.sigmoid(logit)


def init_params(key, input_size, hidden_size):
    """Deterministic synthetic parameters in PyTorch shapes."""
    C = input_size
    ks = jax.random.split(key, 10)
    u = lambda k, shape: jax.random.uniform(k, shape, jnp.float32, 0.5, 1.5)
    n = lambda k, shape, s=0.1: s * jax.random.normal(k, shape, jnp.float32)
    return dict(
        conv1_w=n(ks[0], (C, 2 * C, 3)), conv1_b=n(ks[1], (C,)),
        bn1_gamma=u(ks[2], (C,)), bn1_beta=n(ks[2], (C,)),
        bn1_mean=n(ks[3], (C,)), bn1_var=u(ks[3], (C,)),
        conv2_w=n(ks[4], (C, C, 3)), conv2_b=n(ks[5], (C,)),
        bn2_gamma=u(ks[6], (C,)), bn2_beta=n(ks[6], (C,)),
        bn2_mean=n(ks[7], (C,)), bn2_var=u(ks[7], (C,)),
        fc1_w=n(ks[8], (hidden_size, C * 6)), fc1_b=n(ks[8], (hidden_size,)),
        fc2_w=n(ks[9], (1, hidden_size)), fc2_b=n(ks[9], (1,)),
    )


def _pick_tb(batch):
    # Prefer >=2 grid steps (v7x shards the "parallel" batch axis over 2 TCs) with a
    # lane-dense tile of up to 512 columns to amortize per-step overhead.
    for tb in (512, 256, 128):
        if batch % tb == 0 and batch // tb >= 2:
            return tb
    for tb in (512, 256, 128):
        if batch % tb == 0:
            return tb
    return batch    # small / ragged batch: one block covering the whole batch


def _banded_conv_matrix(w, scale, n_pos, channel_major_cols):
    """Fold a k=3 / pad=1 Conv1d (+ BN scale) into a dense banded matrix.

    Rows: output position-major, row = l_out * C_out + c_out.
    Cols follow the conv-input layout:
      channel_major_cols=True  -> col = c_in * n_pos + l_in   (raw network input)
      channel_major_cols=False -> col = l_in * C_in + c_in    (pooled activations)
    Zero padding is realised by dropping out-of-range taps.
    """
    c_out, c_in, _ = w.shape
    total = jnp.zeros((n_pos, c_out, c_in, n_pos), jnp.float32)
    for k in range(3):
        wk = w[:, :, k] * scale[:, None]                                   # (Cout, Cin)
        shift = jnp.eye(n_pos, n_pos, k=k - 1, dtype=jnp.float32)          # [l, l+k-1]=1
        total = total + jnp.einsum('oi,lm->loim', wk, shift)
    if not channel_major_cols:
        total = jnp.transpose(total, (0, 1, 3, 2))                         # (l, o, m, i)
    return total.reshape(n_pos * c_out, c_in * n_pos)


def relation_network_1d(x, params, input_size, hidden_size):
    """x: PyTorch NCL layout (B, 2*input_size, L=24). Returns (B, 1) sigmoid scores."""
    eps = 1e-5
    C, H = input_size, hidden_size
    B, Cin, L = x.shape
    assert Cin == 2 * C and L == 24, "need NCL input with 2*input_size channels, L == 24"
    L2, L3 = L // 2, L // 4

    # ---- eval-mode BatchNorm folded into per-channel scale / shift ----
    s1 = params["bn1_gamma"] / jnp.sqrt(params["bn1_var"] + eps)
    s2 = params["bn2_gamma"] / jnp.sqrt(params["bn2_var"] + eps)
    sh1c = (params["conv1_b"] - params["bn1_mean"]) * s1 + params["bn1_beta"]
    sh2c = (params["conv2_b"] - params["bn2_mean"]) * s2 + params["bn2_beta"]

    # ---- fold conv taps + zero padding + BN scale into small dense matrices ----
    W1 = _banded_conv_matrix(params["conv1_w"], s1, L, True).astype(jnp.bfloat16)   # (L*C, 2C*L)
    W2 = _banded_conv_matrix(params["conv2_w"], s2, L2, False).astype(jnp.bfloat16)  # (L2*C, L2*C)
    sh1 = jnp.tile(sh1c, L).reshape(L * C, 1)          # rows ordered l*C + c
    sh2 = jnp.tile(sh2c, L2).reshape(L2 * C, 1)

    # fc1: torch flattens (B, C, L3) channel-major (col = c*L3 + l); our rows are l*C + c.
    Wf1 = jnp.transpose(params["fc1_w"].reshape(H, C, L3), (0, 2, 1)) \
             .reshape(H, L3 * C).astype(jnp.bfloat16)
    bf1 = params["fc1_b"].reshape(H, 1)
    Wf2 = params["fc2_w"].astype(jnp.bfloat16)         # (1, H)
    bf2 = params["fc2_b"].reshape(1, 1)

    # ---- layout plumbing: batch on lanes, features (c_in*L + l) on sublanes ----
    xT = x.reshape(B, Cin * L).T.astype(jnp.bfloat16)  # (2C*L, B)

    TB = _pick_tb(B)
    grid = (B // TB,)
    const = lambda shape: pl.BlockSpec(shape, lambda i: (0,) * len(shape))

    flops = 2 * B * (L * C * Cin * L + (L2 * C) ** 2 + H * L3 * C + H)
    bytes_accessed = (xT.size + W1.size + W2.size + Wf1.size + Wf2.size) * 2 \
                     + (sh1.size + sh2.size + bf1.size + bf2.size + B) * 4
    cost = pl.CostEstimate(flops=int(flops), transcendentals=int(B),
                           bytes_accessed=int(bytes_accessed))

    out = pl.pallas_call(
        functools.partial(relation_kernel, C=C, L=L),
        out_shape=jax.ShapeDtypeStruct((1, B), jnp.float32),
        grid=grid,
        in_specs=[
            pl.BlockSpec((Cin * L, TB), lambda i: (0, i)),     # x, batch-tiled on lanes
            const((L * C, Cin * L)), const((L * C, 1)),        # W1, sh1
            const((L2 * C, L2 * C)), const((L2 * C, 1)),       # W2, sh2
            const((H, L3 * C)), const((H, 1)),                 # Wf1, bf1
            const((1, H)), const((1, 1)),                      # Wf2, bf2
        ],
        out_specs=pl.BlockSpec((1, TB), lambda i: (0, i)),     # lane-dense output row
        compiler_params=pltpu.CompilerParams(
            dimension_semantics=("parallel",)),
        cost_estimate=cost,
    )(xT, W1, sh1, W2, sh2, Wf1, bf1, Wf2, bf2)
    return out.reshape(B, 1)


def _reference(x, params, input_size, hidden_size):
    """Pure-JAX f32 reference matching the PyTorch module (eval-mode BN)."""
    eps = 1e-5

    def conv_bn_relu_pool(z, w, b, g, beta, mean, var):
        y = jax.lax.conv_general_dilated(z, w, (1,), ((1, 1),),
                                         dimension_numbers=('NCH', 'OIH', 'NCH'))
        y = y + b[None, :, None]
        y = (y - mean[None, :, None]) / jnp.sqrt(var[None, :, None] + eps)
        y = y * g[None, :, None] + beta[None, :, None]
        y = jax.nn.relu(y)
        Bz, Cz, Lz = y.shape
        return jnp.max(y.reshape(Bz, Cz, Lz // 2, 2), axis=-1)

    o = conv_bn_relu_pool(x, params["conv1_w"], params["conv1_b"],
                          params["bn1_gamma"], params["bn1_beta"],
                          params["bn1_mean"], params["bn1_var"])
    o = conv_bn_relu_pool(o, params["conv2_w"], params["conv2_b"],
                          params["bn2_gamma"], params["bn2_beta"],
                          params["bn2_mean"], params["bn2_var"])
    o = o.reshape(o.shape[0], -1)
    o = jax.nn.relu(o @ params["fc1_w"].T + params["fc1_b"])
    return jax.nn.sigmoid(o @ params["fc2_w"].T + params["fc2_b"])


if __name__ == "__main__":
    input_size, hidden_size = 8, 32
    B, L = 2, 24                              # L=24 so the flatten equals input_size*6

    key = jax.random.PRNGKey(0)
    kx, kp = jax.random.split(key)
    x = jax.random.normal(kx, (B, 2 * input_size, L), jnp.float32)   # NCL, like PyTorch
    params = init_params(kp, input_size, hidden_size)

    # TODO(synk): BatchNorm1d is implemented in inference mode (running stats folded
    # into scale/shift); training-mode batch statistics (momentum=1) are not modeled.
    out = relation_network_1d(x, params, input_size, hidden_size)
    out = jax.block_until_ready(out)

    ref = _reference(x, params, input_size, hidden_size)
    assert out.shape == (B, 1) and bool(jnp.all(jnp.isfinite(out)))
    assert float(jnp.max(jnp.abs(out - ref))) < 3e-2   # bf16-matmul tolerance
    print("KERNEL_OK")
</pallas_src>

<mosaic_0001>
module attributes {stable_mosaic.version = 11 : i64} {
  func.func @relation_kernel(%arg0: i32, %arg1: memref<384x2xbf16, #tpu.memory_space<vmem>>, %arg2: memref<192x384xbf16, #tpu.memory_space<vmem>>, %arg3: memref<192x1xf32, #tpu.memory_space<vmem>>, %arg4: memref<96x96xbf16, #tpu.memory_space<vmem>>, %arg5: memref<96x1xf32, #tpu.memory_space<vmem>>, %arg6: memref<32x48xbf16, #tpu.memory_space<vmem>>, %arg7: memref<32x1xf32, #tpu.memory_space<vmem>>, %arg8: memref<1x32xbf16, #tpu.memory_space<vmem>>, %arg9: memref<1x1xf32, #tpu.memory_space<vmem>>, %arg10: memref<1x2xf32, #tpu.memory_space<vmem>>) attributes {dimension_semantics = [#tpu.dimension_semantics<parallel>], iteration_bounds = array<i64: 1>, scalar_prefetch = 0 : i64, scratch_operands = 0 : i64, tpu.core_type = #tpu.core_type<tc>, window_params = [{transform_indices = @transform_0, window_bounds = array<i64: 384, 2>}, {pipeline_mode = #tpu.pipeline_mode<synchronous>, transform_indices = @transform_1, window_bounds = array<i64: 192, 384>}, {pipeline_mode = #tpu.pipeline_mode<synchronous>, transform_indices = @transform_2, window_bounds = array<i64: 192, 1>}, {pipeline_mode = #tpu.pipeline_mode<synchronous>, transform_indices = @transform_3, window_bounds = array<i64: 96, 96>}, {pipeline_mode = #tpu.pipeline_mode<synchronous>, transform_indices = @transform_4, window_bounds = array<i64: 96, 1>}, {pipeline_mode = #tpu.pipeline_mode<synchronous>, transform_indices = @transform_5, window_bounds = array<i64: 32, 48>}, {pipeline_mode = #tpu.pipeline_mode<synchronous>, transform_indices = @transform_6, window_bounds = array<i64: 32, 1>}, {pipeline_mode = #tpu.pipeline_mode<synchronous>, transform_indices = @transform_7, window_bounds = array<i64: 1, 32>}, {pipeline_mode = #tpu.pipeline_mode<synchronous>, transform_indices = @transform_8, window_bounds = array<i64: 1, 1>}, {transform_indices = @transform_9, window_bounds = array<i64: 1, 2>}]} {
    %c0 = arith.constant 0 : index
    %c0_0 = arith.constant 0 : index
    %0 = vector.load %arg2[%c0, %c0_0] : memref<192x384xbf16, #tpu.memory_space<vmem>>, vector<192x384xbf16>
    %c0_1 = arith.constant 0 : index
    %c0_2 = arith.constant 0 : index
    %1 = vector.load %arg1[%c0_1, %c0_2] : memref<384x2xbf16, #tpu.memory_space<vmem>>, vector<384x2xbf16>
    %cst = arith.constant dense<0.000000e+00> : vector<192x2xf32>
    %2 = tpu.matmul %0, %1, %cst {dimension_numbers = #tpu.dot_dimension_numbers<[1], [0], [0], [1], [0, 0, 1, 1], [], []>} : vector<192x384xbf16>, vector<384x2xbf16>, vector<192x2xf32> -> vector<192x2xf32>
    %c0_3 = arith.constant 0 : index
    %c0_4 = arith.constant 0 : index
    %3 = vector.load %arg3[%c0_3, %c0_4] : memref<192x1xf32, #tpu.memory_space<vmem>>, vector<192x1xf32>
    %4 = vector.broadcast %3 : vector<192x1xf32> to vector<192x2xf32>
    %5 = arith.addf %2, %4 : vector<192x2xf32>
    %cst_5 = arith.constant 0.000000e+00 : f32
    %6 = vector.broadcast %cst_5 : f32 to vector<192x2xf32>
    %7 = arith.maximumf %5, %6 : vector<192x2xf32>
    %8 = vector.shape_cast %7 : vector<192x2xf32> to vector<12x16x2xf32>
    %9 = vector.extract_strided_slice %8 {offsets = [0, 0, 0], sizes = [12, 8, 2], strides = [1, 1, 1]} : vector<12x16x2xf32> to vector<12x8x2xf32>
    %10 = vector.extract_strided_slice %8 {offsets = [0, 8, 0], sizes = [12, 8, 2], strides = [1, 1, 1]} : vector<12x16x2xf32> to vector<12x8x2xf32>
    %11 = arith.maximumf %9, %10 : vector<12x8x2xf32>
    %12 = vector.shape_cast %11 : vector<12x8x2xf32> to vector<96x2xf32>
    %13 = arith.truncf %12 : vector<96x2xf32> to vector<96x2xbf16>
    %c0_6 = arith.constant 0 : index
    %c0_7 = arith.constant 0 : index
    %14 = vector.load %arg4[%c0_6, %c0_7] : memref<96x96xbf16, #tpu.memory_space<vmem>>, vector<96x96xbf16>
    %cst_8 = arith.constant dense<0.000000e+00> : vector<96x2xf32>
    %15 = tpu.matmul %14, %13, %cst_8 {dimension_numbers = #tpu.dot_dimension_numbers<[1], [0], [0], [1], [0, 0, 1, 1], [], []>} : vector<96x96xbf16>, vector<96x2xbf16>, vector<96x2xf32> -> vector<96x2xf32>
    %c0_9 = arith.constant 0 : index
    %c0_10 = arith.constant 0 : index
    %16 = vector.load %arg5[%c0_9, %c0_10] : memref<96x1xf32, #tpu.memory_space<vmem>>, vector<96x1xf32>
    %17 = vector.broadcast %16 : vector<96x1xf32> to vector<96x2xf32>
    %18 = arith.addf %15, %17 : vector<96x2xf32>
    %cst_11 = arith.constant 0.000000e+00 : f32
    %19 = vector.broadcast %cst_11 : f32 to vector<96x2xf32>
    %20 = arith.maximumf %18, %19 : vector<96x2xf32>
    %21 = vector.shape_cast %20 : vector<96x2xf32> to vector<6x16x2xf32>
    %22 = vector.extract_strided_slice %21 {offsets = [0, 0, 0], sizes = [6, 8, 2], strides = [1, 1, 1]} : vector<6x16x2xf32> to vector<6x8x2xf32>
    %23 = vector.extract_strided_slice %21 {offsets = [0, 8, 0], sizes = [6, 8, 2], strides = [1, 1, 1]} : vector<6x16x2xf32> to vector<6x8x2xf32>
    %24 = arith.maximumf %22, %23 : vector<6x8x2xf32>
    %25 = vector.shape_cast %24 : vector<6x8x2xf32> to vector<48x2xf32>
    %26 = arith.truncf %25 : vector<48x2xf32> to vector<48x2xbf16>
    %c0_12 = arith.constant 0 : index
    %c0_13 = arith.constant 0 : index
    %27 = vector.load %arg6[%c0_12, %c0_13] : memref<32x48xbf16, #tpu.memory_space<vmem>>, vector<32x48xbf16>
    %cst_14 = arith.constant dense<0.000000e+00> : vector<32x2xf32>
    %28 = tpu.matmul %27, %26, %cst_14 {dimension_numbers = #tpu.dot_dimension_numbers<[1], [0], [0], [1], [0, 0, 1, 1], [], []>} : vector<32x48xbf16>, vector<48x2xbf16>, vector<32x2xf32> -> vector<32x2xf32>
    %c0_15 = arith.constant 0 : index
    %c0_16 = arith.constant 0 : index
    %29 = vector.load %arg7[%c0_15, %c0_16] : memref<32x1xf32, #tpu.memory_space<vmem>>, vector<32x1xf32>
    %30 = vector.broadcast %29 : vector<32x1xf32> to vector<32x2xf32>
    %31 = arith.addf %28, %30 : vector<32x2xf32>
    %cst_17 = arith.constant 0.000000e+00 : f32
    %32 = vector.broadcast %cst_17 : f32 to vector<32x2xf32>
    %33 = arith.maximumf %31, %32 : vector<32x2xf32>
    %34 = arith.truncf %33 : vector<32x2xf32> to vector<32x2xbf16>
    %c0_18 = arith.constant 0 : index
    %c0_19 = arith.constant 0 : index
    %35 = vector.load %arg8[%c0_18, %c0_19] : memref<1x32xbf16, #tpu.memory_space<vmem>>, vector<1x32xbf16>
    %cst_20 = arith.constant dense<0.000000e+00> : vector<1x2xf32>
    %36 = tpu.matmul %35, %34, %cst_20 {dimension_numbers = #tpu.dot_dimension_numbers<[1], [0], [0], [1], [0, 0, 1, 1], [], []>} : vector<1x32xbf16>, vector<32x2xbf16>, vector<1x2xf32> -> vector<1x2xf32>
    %c0_21 = arith.constant 0 : index
    %c0_22 = arith.constant 0 : index
    %37 = vector.load %arg9[%c0_21, %c0_22] : memref<1x1xf32, #tpu.memory_space<vmem>>, vector<1x1xf32>
    %38 = vector.broadcast %37 : vector<1x1xf32> to vector<1x2xf32>
    %39 = arith.addf %36, %38 : vector<1x2xf32>
    %40 = arith.negf %39 : vector<1x2xf32>
    %41 = math.exp %40 : vector<1x2xf32>
    %cst_23 = arith.constant 1.000000e+00 : f32
    %42 = vector.broadcast %cst_23 : f32 to vector<1x2xf32>
    %43 = arith.addf %42, %41 : vector<1x2xf32>
    %44 = arith.divf %42, %43 : vector<1x2xf32>
    %c0_24 = arith.constant 0 : index
    %c0_25 = arith.constant 0 : index
    %45 = vector.load %arg10[%c0_24, %c0_25] : memref<1x2xf32, #tpu.memory_space<vmem>>, vector<1x2xf32>
    tpu.vector_store %arg10[%c0_24, %c0_25], %44 {strides = array<i32>} : memref<1x2xf32, #tpu.memory_space<vmem>>, vector<1x2xf32>,
    return
  }
  func.func @transform_0(%arg0: i32) -> (i32, i32) {
    %c0_i32 = arith.constant 0 : i32
    %c0_i32_0 = arith.constant 0 : i32
    return %c0_i32, %arg0 : i32, i32
  }
  func.func @transform_1(%arg0: i32) -> (i32, i32) {
    %c0_i32 = arith.constant 0 : i32
    %c0_i32_0 = arith.constant 0 : i32
    %c0_i32_1 = arith.constant 0 : i32
    return %c0_i32, %c0_i32_0 : i32, i32
  }
  func.func @transform_2(%arg0: i32) -> (i32, i32) {
    %c0_i32 = arith.constant 0 : i32
    %c0_i32_0 = arith.constant 0 : i32
    %c0_i32_1 = arith.constant 0 : i32
    return %c0_i32, %c0_i32_0 : i32, i32
  }
  func.func @transform_3(%arg0: i32) -> (i32, i32) {
    %c0_i32 = arith.constant 0 : i32
    %c0_i32_0 = arith.constant 0 : i32
    %c0_i32_1 = arith.constant 0 : i32
    return %c0_i32, %c0_i32_0 : i32, i32
  }
  func.func @transform_4(%arg0: i32) -> (i32, i32) {
    %c0_i32 = arith.constant 0 : i32
    %c0_i32_0 = arith.constant 0 : i32
    %c0_i32_1 = arith.constant 0 : i32
    return %c0_i32, %c0_i32_0 : i32, i32
  }
  func.func @transform_5(%arg0: i32) -> (i32, i32) {
    %c0_i32 = arith.constant 0 : i32
    %c0_i32_0 = arith.constant 0 : i32
    %c0_i32_1 = arith.constant 0 : i32
    return %c0_i32, %c0_i32_0 : i32, i32
  }
  func.func @transform_6(%arg0: i32) -> (i32, i32) {
    %c0_i32 = arith.constant 0 : i32
    %c0_i32_0 = arith.constant 0 : i32
    %c0_i32_1 = arith.constant 0 : i32
    return %c0_i32, %c0_i32_0 : i32, i32
  }
  func.func @transform_7(%arg0: i32) -> (i32, i32) {
    %c0_i32 = arith.constant 0 : i32
    %c0_i32_0 = arith.constant 0 : i32
    %c0_i32_1 = arith.constant 0 : i32
    return %c0_i32, %c0_i32_0 : i32, i32
  }
  func.func @transform_8(%arg0: i32) -> (i32, i32) {
    %c0_i32 = arith.constant 0 : i32
    %c0_i32_0 = arith.constant 0 : i32
    %c0_i32_1 = arith.constant 0 : i32
    return %c0_i32, %c0_i32_0 : i32, i32
  }
  func.func @transform_9(%arg0: i32) -> (i32, i32) {
    %c0_i32 = arith.constant 0 : i32
    %c0_i32_0 = arith.constant 0 : i32
    return %c0_i32, %arg0 : i32, i32
  }
}

</mosaic_0001>

<bundles_post_ra>
// kernel: tpu_custom_call.1
= control target key start
LH: loop header
LB: loop body
LE: loop exit
PB: predicated region body
PF: predicated region fallthrough
CT: control target
= control target key end

     0   :  { %s2188_s0 = inlined_call_operand.vmem [shape: bf16[384,2], index: 0, kind: input, shape index: {}]   ;;  %s2189_s1 = inlined_call_operand.vmem [shape: bf16[192,384], index: 1, kind: input, shape index: {}]   ;;  %s2190_s2 = inlined_call_operand.vmem [shape: f32[192,1], index: 2, kind: input, shape index: {}]   ;;  %s2191_s3 = inlined_call_operand.vmem [shape: bf16[96,96], index: 3, kind: input, shape index: {}]   ;;  %s2192_s4 = inlined_call_operand.vmem [shape: f32[96,1], index: 4, kind: input, shape index: {}]   ;;  %s2193_s5 = inlined_call_operand.vmem [shape: bf16[32,48], index: 5, kind: input, shape index: {}]   ;;  %s2194_s6 = inlined_call_operand.vmem [shape: f32[32,1], index: 6, kind: input, shape index: {}]   ;;  %s2195_s7 = inlined_call_operand.vmem [shape: bf16[1,32], index: 7, kind: input, shape index: {}]   ;;  %s2196_s8 = inlined_call_operand.<no memory space> [shape: f32[1,1], index: 8, kind: input, shape index: {}]   ;;  %s2197_s9 = inlined_call_operand.hbm [shape: f32[1,2], index: 9, kind: output, shape index: {}]  }
   0x1   :  { %v14_v0 = vstv %s2196_s8 }
   0x2   :  { %15 = vst [vmem:[#allocation2] sm:$0x1] %v14_v0 }
   0x3   :  { %v1618_v1 = vld [vmem:[%s2188_s0 + $0x78] sm:$0xff]   ;;  %v1724_v3 = vmov 0   ;;  %v1620_v4 = vld [vmem:[%s2188_s0 + $0x70] sm:$0xff]   ;;  %v1623_v7 = vld [vmem:[%s2188_s0 + $0x68] sm:$0xff]  }
   0x4   :  { %v1619_v2 = vld [vmem:[%s2188_s0 + $0x38] sm:$0xff]   ;;  %1616 = vset.pattern.permute.xlu0 %v1724_v3  ;;  %1617 = vset.pattern.permute.xlu1 %v1724_v3  ;;  %v1622_v6 = vld [vmem:[%s2188_s0 + $0x30] sm:$0xff]   ;;  %v1625_v9 = vld [vmem:[%s2188_s0 + $0x28] sm:$0xff]  }
   0x5   :  { %1402 = vmatprep.subr.bf16.mxu0 %v1618_v1  ;;  %v1621_v5 = vld [vmem:[%s2188_s0 + $0xb8] sm:$0xff]   ;;  %v1624_v8 = vld [vmem:[%s2188_s0 + $0xb0] sm:$0xff]   ;;  %v1626_v10 = vld [vmem:[%s2188_s0 + $0x60] sm:$0xff]  }
   0x6   :  { %1403 = vmatpush3.bf16.msra.mxu0 %v1619_v2  ;;  %1530 = vmatprep.subr.bf16.mxu1 %v1621_v5  ;;  %v1627_v11 = vld [vmem:[%s2188_s0 + $0xa8] sm:$0xff]   ;;  %v1628_v12 = vld [vmem:[%s2188_s0 + $0x20] sm:$0xff]   ;;  %v1629_v13 = vld [vmem:[%s2188_s0 + $0x58] sm:$0xff]  }
   0x7   :  { %1404 = vmatprep.subr.bf16.mxu0 %v1620_v4  ;;  %1531 = vmatpush3.bf16.msra.mxu1 %v1621_v5  ;;  %v1630_v14 = vld [vmem:[%s2188_s0 + $0xa0] sm:$0xff]   ;;  %v1631_v15 = vld [vmem:[%s2188_s0 + $0x18] sm:$0xff]   ;;  %v1632_v17 = vld [vmem:[%s2188_s0 + $0x50] sm:$0xff]  }
   0x8   :  { %1532 = vmatprep.subr.bf16.mxu1 %v1624_v8  ;;  %v1633_v16 = vld [vmem:[%s2188_s0 + $0x98] sm:$0xff]   ;;  %v1634_v18 = vld [vmem:[%s2188_s0 + $0x10] sm:$0xff]   ;;  %v1635_v20 = vld [vmem:[%s2188_s0 + $0x48] sm:$0xff]  }
   0x9   :  { %v1636_v19 = vld [vmem:[%s2188_s0 + $0x90] sm:$0xff]   ;;  %v1637_v21 = vld [vmem:[%s2188_s0 + $0x8] sm:$0xff]   ;;  %v1638_v22 = vld [vmem:[%s2188_s0 + $0x40] sm:$0xff]  }
   0xa   :  { %1405 = vmatpush3.bf16.msra.mxu0 %v1622_v6  ;;  %v1639_v23 = vld [vmem:[%s2188_s0 + $0x88] sm:$0xff]   ;;  %v1643_v24 = vld [vmem:[%s2189_s1 + $0x4] ss:$12 sps:$4 sm:$0xff]   ;;  %v1650_v36 = vld [vmem:[%s2189_s1 + $0x34] ss:$12 sps:$4 sm:$0xff]  }
   0xb   :  { %1406 = vmatprep.subr.bf16.mxu0 %v1623_v7  ;;  %1533 = vmatpush3.bf16.msra.mxu1 %v1624_v8  ;;  %v1640_v25 = vld [vmem:[%s2188_s0] sm:$0xff]   ;;  %v1645_v26 = vld [vmem:[%s2189_s1 + $0x8] ss:$12 sps:$4 sm:$0xff]   ;;  %v155_v37 = vld [vmem:[%s2190_s2 + $0xb8] sm:$0xff] }
   0xc   :  { %1534 = vmatprep.subr.bf16.mxu1 %v1627_v11  ;;  %644 = vmatprep.mubr.bf16.mxu0 %v1643_v24  ;;  %v1644_v27 = vld [vmem:[%s2188_s0 + $0x80] sm:$0xff]   ;;  %v1647_v29 = vld [vmem:[%s2189_s1 + $0x1c] ss:$12 sps:$4 sm:$0xff]   ;;  %v154_v33 = vld [vmem:[%s2190_s2 + $0xb0] sm:$0xff] }
   0xd   :  { %1546 = vmatprep.mubr.bf16.mxu1 %v1645_v26  ;;  %v1641_v28 = vld [vmem:[%s2189_s1] ss:$12 sps:$4 sm:$0xff]   ;;  %v1653_v31 = vld [vmem:[%s2189_s1 + $0x38] ss:$12 sps:$4 sm:$0xff]   ;;  %268 = vperm.xlu1 %1617, %v154_v33   ;;  %v1654_v39 = vld [vmem:[%s2189_s1 + $0x50] ss:$12 sps:$4 sm:$0xff]  }
   0xe   :  { %1407 = vmatpush3.bf16.msra.mxu0 %v1625_v9  ;;  %v1646_v30 = vld [vmem:[%s2189_s1 + $0x20] ss:$12 sps:$4 sm:$0xff]   ;;  %v1649_v35 = vld [vmem:[%s2189_s1 + $0x18] ss:$12 sps:$4 sm:$0xff]   ;;  %v1661_v40 = vld [vmem:[%s2189_s1 + $0x68] ss:$12 sps:$4 sm:$0xff]  }
   0xf   :  { %1408 = vmatprep.subr.bf16.mxu0 %v1626_v10  ;;  %1535 = vmatpush3.bf16.msra.mxu1 %v1627_v11  ;;  %v152_v32 = vld [vmem:[%s2190_s2 + $0xa0] sm:$0xff]  ;;  %v153_v34 = vld [vmem:[%s2190_s2 + $0xa8] sm:$0xff]  ;;  %v150_v42 = vld [vmem:[%s2190_s2 + $0x90] sm:$0xff] }
  0x10   :  { %1536 = vmatprep.subr.bf16.mxu1 %v1630_v14  ;;  %258 = vperm.xlu0 %1616, %v152_v32   ;;  %v148_v38 = vld [vmem:[%s2190_s2 + $0x80] sm:$0xff]  ;;  %v149_v41 = vld [vmem:[%s2190_s2 + $0x88] sm:$0xff]  ;;  %v1652_v43 = vld [vmem:[%s2189_s1 + $0x30] ss:$12 sps:$4 sm:$0xff]  }
  0x11   :  { %273 = vperm.xlu1 %1617, %v155_v37   ;;  %v1655_v44 = vld [vmem:[%s2189_s1 + $0x4c] ss:$12 sps:$4 sm:$0xff]   ;;  %v144_v46 = vld [vmem:[%s2190_s2 + $0x60] sm:$0xff]  ;;  %v146_v50 = vld [vmem:[%s2190_s2 + $0x70] sm:$0xff] }
  0x12   :  { %1409 = vmatpush3.bf16.msra.mxu0 %v1628_v12  ;;  %v151_v45 = vld [vmem:[%s2190_s2 + $0x98] sm:$0xff]  ;;  %v1662_v47 = vld [vmem:[%s2189_s1 + $0x80] ss:$12 sps:$4 sm:$0xff]   ;;  %v1657_v51 = vld [vmem:[%s2189_s1 + $0x48] ss:$12 sps:$4 sm:$0xff]  }
  0x13   :  { %1410 = vmatprep.subr.bf16.mxu0 %v1629_v13  ;;  %1537 = vmatpush3.bf16.msra.mxu1 %v1630_v14  ;;  %v1669_v48 = vld [vmem:[%s2189_s1 + $0x98] ss:$12 sps:$4 sm:$0xff]   ;;  %v145_v49 = vld [vmem:[%s2190_s2 + $0x68] sm:$0xff]  ;;  %v1670_v55 = vld [vmem:[%s2189_s1 + $0xb0] ss:$12 sps:$4 sm:$0xff]  }
  0x14   :  { %1538 = vmatprep.subr.bf16.mxu1 %v1633_v16  ;;  %263 = vperm.xlu0 %1616, %v153_v34   ;;  %v1658_v52 = vld [vmem:[%s2189_s1 + $0x64] ss:$12 sps:$4 sm:$0xff]   ;;  %v147_v53 = vld [vmem:[%s2190_s2 + $0x78] sm:$0xff]  ;;  %v1677_v56 = vld [vmem:[%s2189_s1 + $0xc8] ss:$12 sps:$4 sm:$0xff]  }
  0x15   :  { %243 = vperm.xlu1 %1617, %v149_v41   ;;  %v140_v54 = vld [vmem:[%s2190_s2 + $0x40] sm:$0xff]  ;;  %v141_v57 = vld [vmem:[%s2190_s2 + $0x48] sm:$0xff]  ;;  %v142_v58 = vld [vmem:[%s2190_s2 + $0x50] sm:$0xff] }
  0x16   :  { %1411 = vmatpush3.bf16.msra.mxu0 %v1631_v15  ;;  %v1660_v59 = vld [vmem:[%s2189_s1 + $0x60] ss:$12 sps:$4 sm:$0xff]   ;;  %v1663_v60 = vld [vmem:[%s2189_s1 + $0x7c] ss:$12 sps:$4 sm:$0xff]   ;;  %v1685_v1 = vld [vmem:[%s2189_s1 + $0xf8] ss:$12 sps:$4 sm:$0xff]  }
  0x17   :  { %1412 = vmatprep.subr.bf16.mxu0 %v1632_v17  ;;  %1539 = vmatpush3.bf16.msra.mxu1 %v1633_v16  ;;  %v143_v61 = vld [vmem:[%s2190_s2 + $0x58] sm:$0xff]  ;;  %v136_v62 = vld [vmem:[%s2190_s2 + $0x20] sm:$0xff]  ;;  %v137_v0 = vld [vmem:[%s2190_s2 + $0x28] sm:$0xff] }
  0x18   :  { %1540 = vmatprep.subr.bf16.mxu1 %v1636_v19  ;;  %238 = vperm.xlu0 %1616, %v148_v38   ;;  %v1678_v63 = vld [vmem:[%s2189_s1 + $0xe0] ss:$12 sps:$4 sm:$0xff]   ;;  %v138_v2 = vld [vmem:[%s2190_s2 + $0x30] sm:$0xff]  ;;  %v1665_v3 = vld [vmem:[%s2189_s1 + $0x78] ss:$12 sps:$4 sm:$0xff]  }
  0x19   :  { %253 = vperm.xlu1 %1617, %v151_v45   ;;  %v1666_v4 = vld [vmem:[%s2189_s1 + $0x94] ss:$12 sps:$4 sm:$0xff]   ;;  %v139_v5 = vld [vmem:[%s2190_s2 + $0x38] sm:$0xff] }
  0x1a   :  { %1413 = vmatpush3.bf16.msra.mxu0 %v1634_v18 }
  0x1b   :  { %1414 = vmatprep.subr.bf16.mxu0 %v1635_v20  ;;  %1541 = vmatpush3.bf16.msra.mxu1 %v1636_v19 }
  0x1c   :  { %1542 = vmatprep.subr.bf16.mxu1 %v1639_v23  ;;  %248 = vperm.xlu0 %1616, %v150_v42  }
  0x1d   :  { %223 = vperm.xlu1 %1617, %v145_v49  }
  0x1e   :  { %1415 = vmatpush3.bf16.msra.mxu0 %v1637_v21 }
  0x1f   :  { %1416 = vmatprep.subr.bf16.mxu0 %v1638_v22  ;;  %1543 = vmatpush3.bf16.msra.mxu1 %v1639_v23 }
  0x20   :  { %1544 = vmatprep.subr.bf16.mxu1 %v1644_v27  ;;  %218 = vperm.xlu0 %1616, %v144_v46  }
  0x21   :  { %233 = vperm.xlu1 %1617, %v147_v53  }
  0x22   :  { %1417 = vmatpush3.bf16.msra.mxu0 %v1640_v25 }
  0x23   :  { %1545 = vmatpush3.bf16.msra.mxu1 %v1644_v27 }
  0x24   :  { %228 = vperm.xlu0 %1616, %v146_v50  }
  0x25   :  { %645 = vmatmul.mubr.bf16.vlgmr.msra.gmra.mxu0 %v1641_v28  ;;  %203 = vperm.xlu1 %1617, %v141_v57  }
  0x26   :  { %652 = vmatprep.mubr.bf16.mxu0 %v1647_v29  ;;  %1547 = vmatmul.mubr.bf16.vlgmr.msra.gmra.mxu1 %v1646_v30 }
  0x27   :  { %1550 = vmatprep.mubr.bf16.mxu1 %v1653_v31 }
  0x28   :  { %198 = vperm.xlu0 %1616, %v140_v54  }
  0x29   :  { %213 = vperm.xlu1 %1617, %v143_v61  }
  0x2c   :  { %208 = vperm.xlu0 %1616, %v142_v58  }
  0x2d   :  { %653 = vmatmul.mubr.bf16.gmra.mxu0 %v1649_v35  ;;  %183 = vperm.xlu1 %1617, %v137_v0  }
  0x2e   :  { %660 = vmatprep.mubr.bf16.mxu0 %v1650_v36  ;;  %1551 = vmatmul.mubr.bf16.gmra.mxu1 %v1654_v39 }
  0x2f   :  { %1554 = vmatprep.mubr.bf16.mxu1 %v1661_v40 }
  0x30   :  { %178 = vperm.xlu0 %1616, %v136_v62  }
  0x34   :  { %188 = vperm.xlu0 %1616, %v138_v2  }
  0x35   :  { %661 = vmatmul.mubr.bf16.gmra.mxu0 %v1652_v43 }
  0x36   :  { %668 = vmatprep.mubr.bf16.mxu0 %v1655_v44  ;;  %1555 = vmatmul.mubr.bf16.gmra.mxu1 %v1662_v47 }
  0x37   :  { %1558 = vmatprep.mubr.bf16.mxu1 %v1669_v48 }
  0x3d   :  { %669 = vmatmul.mubr.bf16.gmra.mxu0 %v1657_v51 }
  0x3e   :  { %676 = vmatprep.mubr.bf16.mxu0 %v1658_v52  ;;  %1559 = vmatmul.mubr.bf16.gmra.mxu1 %v1670_v55 }
  0x3f   :  { %1562 = vmatprep.mubr.bf16.mxu1 %v1677_v56 }
  0x45   :  { %677 = vmatmul.mubr.bf16.gmra.mxu0 %v1660_v59 }
  0x46   :  { %684 = vmatprep.mubr.bf16.mxu0 %v1663_v60  ;;  %1563 = vmatmul.mubr.bf16.gmra.mxu1 %v1678_v63 }
  0x47   :  { %1566 = vmatprep.mubr.bf16.mxu1 %v1685_v1 }
  0x48   :  { %16 = vsyncpa [#allocation4], 0  ;;  %v132_v6 = vld [vmem:[%s2190_s2] sm:$0xff]  ;;  %v1686_v7 = vld [vmem:[%s2189_s1 + $0x110] ss:$12 sps:$4 sm:$0xff]   ;;  %193 = vperm.xlu1 %1617, %v139_v5   ;;  %vm1026_vm0 = vcmask 785408  }
  0x49   :  { %158 = vperm.xlu0 %1616, %v132_v6   ;;  %v133_v8 = vld [vmem:[%s2190_s2 + $0x8] sm:$0xff]  ;;  %v134_v9 = vld [vmem:[%s2190_s2 + $0x10] sm:$0xff]  ;;  %v135_v12 = vld [vmem:[%s2190_s2 + $0x18] sm:$0xff]  ;;  %vm1185_vm1 = vcmask 392192   ;;  %vm1726_vm2 = vmmov 0   ;;  %vm1258_vm3 = vcmask 261120  }
  0x4a   :  { %v1668_v10 = vld [vmem:[%s2189_s1 + $0x90] ss:$12 sps:$4 sm:$0xff]   ;;  %v1671_v11 = vld [vmem:[%s2189_s1 + $0xac] ss:$12 sps:$4 sm:$0xff]   ;;  %v932_v13 = vld [vmem:[%s2192_s4 + $0x40] sm:$0xff]  ;;  %s1727_s16 = smov [#allocation3]  }
  0x4b   :  { %v933_v14 = vld [vmem:[%s2192_s4 + $0x48] sm:$0xff]  ;;  %v934_v15 = vld [vmem:[%s2192_s4 + $0x50] sm:$0xff]  ;;  %v935_v18 = vld [vmem:[%s2192_s4 + $0x58] sm:$0xff]  ;;  %s1316_s17 = sshll.u32 %s1727_s16, 4  ;;  %vm1308_vm4 = vcmask 8192   ;;  %s1317_s17 = int_to_ptr.vmem [resolvable:$true] %s1316_s17 }
  0x4c   :  { %163 = vperm.xlu1 %1617, %v133_v8   ;;  %v1673_v16 = vld [vmem:[%s2189_s1 + $0xa8] ss:$12 sps:$4 sm:$0xff]   ;;  %v1674_v17 = vld [vmem:[%s2189_s1 + $0xc4] ss:$12 sps:$4 sm:$0xff]   ;;  %v1676_v22 = vld [vmem:[%s2189_s1 + $0xc0] ss:$12 sps:$4 sm:$0xff]   ;;  %p1707_p1 = scmp.lt.s32.totalorder %s1317_s17, %s1317_s17 }
  0x4d   :  { %685 = vmatmul.mubr.bf16.gmra.mxu0 %v1665_v3  ;;  %168 = vperm.xlu0 %1616, %v134_v9   ;;  %v928_v19 = vld [vmem:[%s2192_s4 + $0x20] sm:$0xff]  ;;  %v929_v20 = vld [vmem:[%s2192_s4 + $0x28] sm:$0xff]  ;;  %v930_v21 = vld [vmem:[%s2192_s4 + $0x30] sm:$0xff]  ;;  %s1706_s8 = scalar_lea.vmem %s1317_s17, 32 }
  0x4e   :  { %692 = vmatprep.mubr.bf16.mxu0 %v1666_v4  ;;  %1567 = vmatmul.mubr.bf16.gmra.mxu1 %v1686_v7  ;;  %v1679_v23 = vld [vmem:[%s2189_s1 + $0xdc] ss:$12 sps:$4 sm:$0xff]   ;;  %v924_v25 = vld [vmem:[%s2192_s4] sm:$0xff]  ;;  %v926_v27 = vld [vmem:[%s2192_s4 + $0x10] sm:$0xff] }
  0x4f   :  { %v931_v24 = vld [vmem:[%s2192_s4 + $0x38] sm:$0xff]  ;;  %v925_v26 = vld [vmem:[%s2192_s4 + $0x8] sm:$0xff]  ;;  %v1682_v29 = vld [vmem:[%s2189_s1 + $0xf4] ss:$12 sps:$4 sm:$0xff]  }
  0x50   :  { %173 = vperm.xlu1 %1617, %v135_v12   ;;  %v1681_v28 = vld [vmem:[%s2189_s1 + $0xd8] ss:$12 sps:$4 sm:$0xff]   ;;  %v1153_v31 = vld [vmem:[%s2194_s6 + $0x10] sm:$0xff]  ;;  %v1152_v36 = vld [vmem:[%s2194_s6 + $0x8] sm:$0xff] }
  0x51   :  { %978 = vperm.xlu0 %1616, %v932_v13   ;;  %v927_v30 = vld [vmem:[%s2192_s4 + $0x18] sm:$0xff]  ;;  %v1151_v33 = vld [vmem:[%s2194_s6] sm:$0xff]  ;;  %v1689_v38 = vld [vmem:[%s2189_s1 + $0x108] ss:$12 sps:$4 sm:$0xff]  }
  0x52   :  { %v1154_v32 = vld [vmem:[%s2194_s6 + $0x18] sm:$0xff]  ;;  %v1248_v37 = vld [vmem:[#allocation2] sm:$0x1] }
  0x53   :  { %v1684_v34 = vld [vmem:[%s2189_s1 + $0xf0] ss:$12 sps:$4 sm:$0xff]   ;;  %v1687_v35 = vld [vmem:[%s2189_s1 + $0x10c] ss:$12 sps:$4 sm:$0xff]   ;;  %v1690_v60 = vld [vmem:[%s2191_s3] sm:$0xff]  }
  0x54   :  { %983 = vperm.xlu1 %1617, %v933_v14   ;;  %1582 = vmatprep.mubr.msk.bf16.mxu1 %vm1026_vm0, %v1690_v60 }
  0x55   :  { %693 = vmatmul.mubr.bf16.gmra.mxu0 %v1668_v10  ;;  %988 = vperm.xlu0 %1616, %v934_v15  }
  0x56   :  { %700 = vmatprep.mubr.bf16.mxu0 %v1671_v11 }
  0x58   :  { %993 = vperm.xlu1 %1617, %v935_v18  }
  0x59   :  { %958 = vperm.xlu0 %1616, %v928_v19  }
  0x5c   :  { %963 = vperm.xlu1 %1617, %v929_v20  }
  0x5d   :  { %701 = vmatmul.mubr.bf16.gmra.mxu0 %v1673_v16  ;;  %968 = vperm.xlu0 %1616, %v930_v21  }
  0x5e   :  { %708 = vmatprep.mubr.bf16.mxu0 %v1674_v17 }
  0x60   :  { %973 = vperm.xlu1 %1617, %v931_v24  }
  0x61   :  { %938 = vperm.xlu0 %1616, %v924_v25  }
  0x64   :  { %943 = vperm.xlu1 %1617, %v925_v26  }
  0x65   :  { %709 = vmatmul.mubr.bf16.gmra.mxu0 %v1676_v22  ;;  %948 = vperm.xlu0 %1616, %v926_v27  }
  0x66   :  { %716 = vmatprep.mubr.bf16.mxu0 %v1679_v23 }
  0x68   :  { %953 = vperm.xlu1 %1617, %v927_v30  }
  0x69   :  { %1167 = vperm.xlu0 %1616, %v1153_v31  }
  0x6c   :  { %1172 = vperm.xlu1 %1617, %v1154_v32  }
  0x6d   :  { %717 = vmatmul.mubr.bf16.gmra.mxu0 %v1681_v28  ;;  %1157 = vperm.xlu0 %1616, %v1151_v33  }
  0x6e   :  { %724 = vmatprep.mubr.bf16.mxu0 %v1682_v29 }
  0x70   :  { %1162 = vperm.xlu1 %1617, %v1152_v36  }
  0x71   :  { %1251 = vperm.xlu0 %1616, %v1248_v37  }
  0x75   :  { %725 = vmatmul.mubr.bf16.gmra.mxu0 %v1684_v34 }
  0x76   :  { %732 = vmatprep.mubr.bf16.mxu0 %v1687_v35 }
  0x7d   :  { %733 = vmatmul.mubr.bf16.gmra.mxu0 %v1689_v38 }
  0x88   :  { %v2083_v40 = vpop.permute.xlu1 %268 }
  0x8b   :  { %v2081_v39 = vpop.permute.xlu0 %258 }
  0x8c   :  { %v2087_v42 = vpop.permute.xlu1 %273 }
  0x8f   :  { %v2085_v41 = vpop.permute.xlu0 %263 }
  0x90   :  { %v2091_v44 = vpop.permute.xlu1 %243 }
  0x93   :  { %v2089_v43 = vpop.permute.xlu0 %238 }
  0x94   :  { %v2095_v46 = vpop.permute.xlu1 %253 }
  0x97   :  { %v2093_v45 = vpop.permute.xlu0 %248 }
  0x98   :  { %v2099_v48 = vpop.permute.xlu1 %223 }
  0x9b   :  { %v2097_v47 = vpop.permute.xlu0 %218 }
  0x9c   :  { %v2103_v50 = vpop.permute.xlu1 %233 }
  0x9f   :  { %v2101_v49 = vpop.permute.xlu0 %228 }
  0xa0   :  { %v2107_v52 = vpop.permute.xlu1 %203 }
  0xa3   :  { %v2105_v51 = vpop.permute.xlu0 %198 }
  0xa4   :  { %v2111_v54 = vpop.permute.xlu1 %213 }
  0xa7   :  { %v2109_v53 = vpop.permute.xlu0 %208 }
  0xa8   :  { %v184_v56 = vpop.permute.xlu1 %183 }
  0xab   :  { %v179_v55 = vpop.permute.xlu0 %178 }
  0xaf   :  { %v189_v57 = vpop.permute.xlu0 %188 }
  0xc3   :  { %v2113_v59 = vpop.permute.xlu1 %193 }
  0xc4   :  { %v159_v62 = vpop.permute.xlu0 %158 }
  0xc7   :  { %v164_v5 = vpop.permute.xlu1 %163 }
  0xc8   :  { %v169_v13 = vpop.permute.xlu0 %168 }
  0xcb   :  { %v174_v22 = vpop.permute.xlu1 %173 }
  0xe5   :  { %v1418_v58 = vpop.f32.mrf.mxu0 }
  0xe6   :  { %v1548_v0 = vpop.f32.mrf.mxu1 }
  0xe7   :  { %v1419_v61 = vpop.f32.mrf.mxu0 }
  0xe8   :  { %v1420_v63 = vadd.f32 %v1419_v61, %v1418_v58  ;;  %v775_v3 = vpop.f32.mrf.mxu1 }
  0xe9   :  { %v1421_v1 = vpop.f32.mrf.mxu0 }
  0xea   :  { %v647_v2 = vadd.f32 %v1420_v63, %v159_v62  ;;  %v1549_v7 = vpop.f32.mrf.mxu1 }
  0xeb   :  { %v1422_v4 = vpop.f32.mrf.mxu0 }
  0xec   :  { %v1423_v6 = vadd.f32 %v1422_v4, %v1421_v1  ;;  %v776_v9 = vadd.f32 %v775_v3, %v647_v2  ;;  %v778_v11 = vpop.f32.mrf.mxu1 }
  0xed   :  { %v1424_v8 = vpop.f32.mrf.mxu0 }
  0xee   :  { %v650_v10 = vadd.f32 %v1423_v6, %v164_v5  ;;  %v1552_v17 = vpop.f32.mrf.mxu1  ;;  %v870_v18 = vmax.f32 %v776_v9, 0.0 }
  0xef   :  { %v1425_v12 = vpop.f32.mrf.mxu0 }
  0xf0   :  { %v1426_v14 = vadd.f32 %v1425_v12, %v1424_v8  ;;  %v779_v15 = vadd.f32 %v778_v11, %v650_v10  ;;  %v791_v27 = vpop.f32.mrf.mxu1 }
  0xf1   :  { %v1427_v16 = vpop.f32.mrf.mxu0 }
  0xf2   :  { %v871_v19 = vmax.f32 %v779_v15, 0.0  ;;  %v655_v20 = vadd.f32 %v1426_v14, %v169_v13  ;;  %v1553_v33 = vpop.f32.mrf.mxu1 }
  0xf3   :  { %v1428_v21 = vpop.f32.mrf.mxu0 }
  0xf4   :  { %v894_v23 = vmax.f32 %v870_v18, %v871_v19  ;;  %v784_v24 = vadd.f32 %v1548_v0, %v655_v20  ;;  %v1429_v25 = vadd.f32 %v1428_v21, %v1427_v16  ;;  %v794_v61 = vpop.f32.mrf.mxu1 }
  0xf5   :  { %v1430_v26 = vpop.f32.mrf.mxu0 }
  0xf6   :  { %v658_v28 = vadd.f32 %v1429_v25, %v174_v22  ;;  %v872_v34 = vmax.f32 %v784_v24, 0.0  ;;  %v1556_v5 = vpop.f32.mrf.mxu1 }
  0xf7   :  { %v1431_v29 = vpop.f32.mrf.mxu0 }
  0xf8   :  { %v787_v30 = vadd.f32 %v1549_v7, %v658_v28  ;;  %v1432_v31 = vadd.f32 %v1431_v29, %v1430_v26  ;;  %v807_v12 = vpop.f32.mrf.mxu1 }
  0xf9   :  { %v1433_v32 = vpop.f32.mrf.mxu0 }
  0xfa   :  { %v873_v35 = vmax.f32 %v787_v30, 0.0  ;;  %v663_v36 = vadd.f32 %v1432_v31, %v179_v55  ;;  %v1557_v19 = vpop.f32.mrf.mxu1 }
  0xfb   :  { %v1434_v37 = vpop.f32.mrf.mxu0 }
  0xfc   :  { %v895_v38 = vmax.f32 %v872_v34, %v873_v35  ;;  %v1435_v58 = vadd.f32 %v1434_v37, %v1433_v32  ;;  %v792_v62 = vadd.f32 %v791_v27, %v663_v36  ;;  %v810_v26 = vpop.f32.mrf.mxu1 }
  0xfd   :  { %v1436_v60 = vpop.f32.mrf.mxu0 }
  0xfe   :  { %v666_v63 = vadd.f32 %v1435_v58, %v184_v56  ;;  %v2119_v0 = vpack.c.bf16 %v895_v38, %v894_v23  ;;  %v874_v6 = vmax.f32 %v792_v62, 0.0  ;;  %v2128_v62 = vpop.f32.mrf.mxu1 }
  0xff   :  { %v1437_v1 = vpop.f32.mrf.mxu0 }
 0x100   :  { %v1438_v2 = vadd.f32 %v1437_v1, %v1436_v60  ;;  %v795_v3 = vadd.f32 %v794_v61, %v666_v63 }
 0x101   :  { %v1439_v4 = vpop.f32.mrf.mxu0 }
 0x102   :  { %v671_v7 = vadd.f32 %v1438_v2, %v189_v57  ;;  %v875_v8 = vmax.f32 %v795_v3, 0.0 }
 0x103   :  { %v1440_v9 = vpop.f32.mrf.mxu0 }
 0x104   :  { %v896_v10 = vmax.f32 %v874_v6, %v875_v8  ;;  %v1441_v55 = vadd.f32 %v1440_v9, %v1439_v4  ;;  %v800_v13 = vadd.f32 %v1552_v17, %v671_v7  ;;  %v2130_v4 = vpop.f32.mrf.mxu1 }
 0x105   :  { %v1442_v11 = vpop.f32.mrf.mxu0 }
 0x106   :  { %v674_v14 = vadd.f32 %v1441_v55, %v2113_v59  ;;  %v876_v20 = vmax.f32 %v800_v13, 0.0  ;;  %v1561_v8 = vpop.f32.mrf.mxu1 }
 0x107   :  { %v1443_v15 = vpop.f32.mrf.mxu0 }
 0x108   :  { %v803_v56 = vadd.f32 %v1553_v33, %v674_v14  ;;  %v1444_v16 = vadd.f32 %v1443_v15, %v1442_v11 }
 0x109   :  { %v1445_v18 = vpop.f32.mrf.mxu0 }
 0x10a   :  { %v877_v21 = vmax.f32 %v803_v56, 0.0  ;;  %v679_v22 = vadd.f32 %v1444_v16, %v2105_v51 }
 0x10b   :  { %v1446_v23 = vpop.f32.mrf.mxu0 }
 0x10c   :  { %v1447_v57 = vadd.f32 %v1446_v23, %v1445_v18  ;;  %v897_v24 = vmax.f32 %v876_v20, %v877_v21  ;;  %v808_v27 = vadd.f32 %v807_v12, %v679_v22 }
 0x10d   :  { %v1448_v25 = vpop.f32.mrf.mxu0 }
 0x10e   :  { %v682_v28 = vadd.f32 %v1447_v57, %v2107_v52  ;;  %v2124_v17 = vpack.c.bf16 %v897_v24, %v896_v10  ;;  %v878_v32 = vmax.f32 %v808_v27, 0.0  ;;  %v826_v10 = vpop.f32.mrf.mxu1 }
 0x10f   :  { %v1449_v59 = vpop.f32.mrf.mxu0 }
 0x110   :  { %v1450_v29 = vadd.f32 %v1449_v59, %v1448_v25  ;;  %v811_v30 = vadd.f32 %v810_v26, %v682_v28  ;;  %v1564_v11 = vpop.f32.mrf.mxu1 }
 0x111   :  { %v1451_v31 = vpop.f32.mrf.mxu0 }
 0x112   :  { %v687_v33 = vadd.f32 %v1450_v29, %v2109_v53  ;;  %v879_v34 = vmax.f32 %v811_v30, 0.0  ;;  %v839_v14 = vpop.f32.mrf.mxu1 }
 0x113   :  { %v1452_v35 = vpop.f32.mrf.mxu0 }
 0x114   :  { %v898_v51 = vmax.f32 %v878_v32, %v879_v34  ;;  %v1453_v36 = vadd.f32 %v1452_v35, %v1451_v31  ;;  %v816_v38 = vadd.f32 %v1556_v5, %v687_v33  ;;  %v1565_v56 = vpop.f32.mrf.mxu1 }
 0x115   :  { %v1454_v37 = vpop.f32.mrf.mxu0 }
 0x116   :  { %v690_v58 = vadd.f32 %v1453_v36, %v2111_v54  ;;  %v880_v63 = vmax.f32 %v816_v38, 0.0 }
 0x117   :  { %v1455_v60 = vpop.f32.mrf.mxu0 }
 0x118   :  { %v819_v61 = vadd.f32 %v1557_v19, %v690_v58  ;;  %v842_v19 = vpop.f32.mrf.mxu1 }
 0x119   :  { %v1457_v52 = vpop.f32.mrf.mxu0 }
 0x11a   :  { %v881_v1 = vmax.f32 %v819_v61, 0.0  ;;  %v1568_v22 = vpop.f32.mrf.mxu1 }
 0x11b   :  { %v1458_v2 = vpop.f32.mrf.mxu0 }
 0x11c   :  { %v899_v3 = vmax.f32 %v880_v63, %v881_v1  ;;  %v855_v24 = vpop.f32.mrf.mxu1  ;;  %v1459_v38 = vadd.f32 %v1458_v2, %v1457_v52 }
 0x11d   :  { %v1460_v53 = vpop.f32.mrf.mxu0 }
 0x11e   :  { %v2132_v6 = vpack.c.bf16 %v899_v3, %v898_v51  ;;  %v1569_v29 = vpop.f32.mrf.mxu1 }
 0x11f   :  { %v1461_v7 = vpop.f32.mrf.mxu0 }
 0x120   :  { %v1462_v58 = vadd.f32 %v1461_v7, %v1460_v53  ;;  %v858_v63 = vpop.f32.mrf.mxu1 }
 0x121   :  { %v1463_v9 = vpop.f32.mrf.mxu0 }
 0x122   :  { %v703_v2 = vadd.f32 %v1462_v58, %v2101_v49 }
 0x123   :  { %v1464_v5 = vpop.f32.mrf.mxu0 }
 0x124   :  { %v1465_v32 = vadd.f32 %v1464_v5, %v1463_v9  ;;  %v1456_v9 = vadd.f32 %v1455_v60, %v1454_v37 }
 0x125   :  { %v1466_v54 = vpop.f32.mrf.mxu0 }
 0x126   :  { %v706_v5 = vadd.f32 %v1465_v32, %v2103_v50 }
 0x127   :  { %v1467_v55 = vpop.f32.mrf.mxu0 }
 0x128   :  { %v1468_v34 = vadd.f32 %v1467_v55, %v1466_v54  ;;  %v835_v37 = vadd.f32 %v1561_v8, %v706_v5 }
 0x129   :  { %v1469_v12 = vpop.f32.mrf.mxu0 }
 0x12b   :  { %v1470_v13 = vpop.f32.mrf.mxu0 }
 0x12c   :  { %v1471_v28 = vadd.f32 %v1470_v13, %v1469_v12 }
 0x12d   :  { %v1472_v15 = vpop.f32.mrf.mxu0 }
 0x12e   :  { %v714_v61 = vadd.f32 %v1471_v28, %v2091_v44  ;;  %v698_v44 = vadd.f32 %v1459_v38, %v2099_v48 }
 0x12f   :  { %v1473_v16 = vpop.f32.mrf.mxu0 }
 0x130   :  { %v1474_v30 = vadd.f32 %v1473_v16, %v1472_v15  ;;  %v843_v53 = vadd.f32 %v842_v19, %v714_v61 }
 0x131   :  { %v1475_v18 = vpop.f32.mrf.mxu0 }
 0x132   :  { %v719_v3 = vadd.f32 %v1474_v30, %v2093_v45  ;;  %v984_v30 = vpop.permute.xlu1 %983 }
 0x133   :  { %v1476_v20 = vpop.f32.mrf.mxu0 }
 0x134   :  { %v1477_v26 = vadd.f32 %v1476_v20, %v1475_v18  ;;  %v848_v7 = vadd.f32 %v1564_v11, %v719_v3  ;;  %v827_v18 = vadd.f32 %v826_v10, %v698_v44  ;;  %v887_v20 = vmax.f32 %v843_v53, 0.0 }
 0x135   :  { %v1478_v21 = vpop.f32.mrf.mxu0 }
 0x136   :  { %v722_v35 = vadd.f32 %v1477_v26, %v2095_v46  ;;  %v711_v46 = vadd.f32 %v1468_v34, %v2089_v43  ;;  %v888_v49 = vmax.f32 %v848_v7, 0.0  ;;  %v994_v32 = vpop.permute.xlu1 %993 }
 0x137   :  { %v1479_v23 = vpop.f32.mrf.mxu0 }
 0x138   :  { %v1480_v31 = vadd.f32 %v1479_v23, %v1478_v21  ;;  %v851_v55 = vadd.f32 %v1565_v56, %v722_v35  ;;  %v840_v50 = vadd.f32 %v839_v14, %v711_v46  ;;  %v832_v56 = vadd.f32 %v2128_v62, %v703_v2 }
 0x139   :  { %v1481_v57 = vpop.f32.mrf.mxu0  ;;  %v883_v14 = vmax.f32 %v827_v18, 0.0 }
 0x13a   :  { %v727_v12 = vadd.f32 %v1480_v31, %v2081_v39  ;;  %v889_v60 = vmax.f32 %v851_v55, 0.0  ;;  %v886_v23 = vmax.f32 %v840_v50, 0.0  ;;  %v884_v8 = vmax.f32 %v832_v56, 0.0  ;;  %v979_v31 = vpop.permute.xlu0 %978 }
 0x13b   :  { %v1482_v25 = vpop.f32.mrf.mxu0 }
 0x13c   :  { %v1483_v27 = vadd.f32 %v1482_v25, %v1481_v57  ;;  %v856_v45 = vadd.f32 %v855_v24, %v727_v12  ;;  %v902_v24 = vmax.f32 %v886_v23, %v887_v20 }
 0x13d   :  { %v1484_v59 = vpop.f32.mrf.mxu0 }
 0x13e   :  { %v730_v36 = vadd.f32 %v1483_v27, %v2085_v41  ;;  %v890_v21 = vmax.f32 %v856_v45, 0.0  ;;  %v989_v34 = vpop.permute.xlu0 %988 }
 0x13f   :  { %v1485_v33 = vpop.f32.mrf.mxu0 }
 0x140   :  { %v1486_v51 = vadd.f32 %v1485_v33, %v1484_v59  ;;  %v859_v41 = vadd.f32 %v858_v63, %v730_v36  ;;  %v1692_v59 = vld [vmem:[%s2191_s3 + $0x10] sm:$0xff]   ;;  %v964_v36 = vpop.permute.xlu1 %963 }
 0x141   :  { %v1487_v1 = vpop.f32.mrf.mxu0 }
 0x142   :  { %v735_v13 = vadd.f32 %v1486_v51, %v2083_v40  ;;  %v695_v40 = vadd.f32 %v1456_v9, %v2097_v47  ;;  %v891_v16 = vmax.f32 %v859_v41, 0.0  ;;  %v903_v47 = vmax.f32 %v888_v49, %v889_v60  ;;  %v959_v58 = vpop.permute.xlu0 %958 }
 0x143   :  { %v1488_v54 = vpop.f32.mrf.mxu0 }
 0x144   :  { %v1489_v52 = vadd.f32 %v1488_v54, %v1487_v1  ;;  %v864_v15 = vadd.f32 %v1568_v22, %v735_v13  ;;  %v824_v11 = vadd.f32 %v2130_v4, %v695_v40  ;;  %v885_v22 = vmax.f32 %v835_v37, 0.0  ;;  %v1691_v4 = vld [vmem:[%s2191_s3 + $0x8] sm:$0xff]   ;;  %v974_v1 = vpop.permute.xlu1 %973 }
 0x145   :  { %v910_v62 = vpack.c.bf16 %v903_v47, %v902_v24 }
 0x146   :  { %v738_v39 = vadd.f32 %v1489_v52, %v2087_v42  ;;  %v892_v48 = vmax.f32 %v864_v15, 0.0  ;;  %v904_v42 = vmax.f32 %v890_v21, %v891_v16  ;;  %v882_v26 = vmax.f32 %v824_v11, 0.0  ;;  %v969_v12 = vpop.permute.xlu0 %968 }
 0x147   :  { %v901_v10 = vmax.f32 %v884_v8, %v885_v22 }
 0x148   :  { %v867_v43 = vadd.f32 %v1569_v29, %v738_v39  ;;  %v900_v27 = vmax.f32 %v882_v26, %v883_v14  ;;  %v1696_v29 = vld [vmem:[%s2193_s5] sm:$0xff]   ;;  %v944_v5 = vpop.permute.xlu1 %943 }
 0x14a   :  { %v893_v19 = vmax.f32 %v867_v43, 0.0  ;;  %v909_v28 = vpack.c.bf16 %v901_v10, %v900_v27  ;;  %v939_v46 = vpop.permute.xlu0 %938 }
 0x14c   :  { %v905_v57 = vmax.f32 %v892_v48, %v893_v19  ;;  %v954_v39 = vpop.permute.xlu1 %953 }
 0x14e   :  { %v911_v25 = vpack.c.bf16 %v905_v57, %v904_v42  ;;  %v949_v18 = vpop.permute.xlu0 %948 }
 0x150   :  { %1570 = vmatprep.subr.bf16.mxu1 %v911_v25 }
 0x151   :  { %1571 = vmatpush3.bf16.msra.mxu1 %v911_v25 }
 0x152   :  { %1572 = vmatprep.subr.bf16.mxu1 %v910_v62 }
 0x155   :  { %1573 = vmatpush3.bf16.msra.mxu1 %v910_v62 }
 0x156   :  { %1574 = vmatprep.subr.bf16.mxu1 %v909_v28 }
 0x159   :  { %1575 = vmatpush3.bf16.msra.mxu1 %v909_v28  ;;  %v1697_v28 = vld [vmem:[%s2193_s5 + $0x8] sm:$0xff]  }
 0x15a   :  { %1576 = vmatprep.subr.bf16.mxu1 %v2132_v6 }
 0x15d   :  { %1577 = vmatpush3.bf16.msra.mxu1 %v2132_v6  ;;  %v1694_v6 = vld [vmem:[%s2191_s3 + $0x20] sm:$0xff]  }
 0x15e   :  { %1578 = vmatprep.subr.bf16.mxu1 %v2124_v17 }
 0x161   :  { %1579 = vmatpush3.bf16.msra.mxu1 %v2124_v17  ;;  %v1693_v17 = vld [vmem:[%s2191_s3 + $0x18] sm:$0xff]  }
 0x162   :  { %1580 = vmatprep.subr.bf16.mxu1 %v2119_v0 }
 0x165   :  { %1581 = vmatpush3.bf16.msra.mxu1 %v2119_v0  ;;  %v1695_v0 = vld [vmem:[%s2191_s3 + $0x28] sm:$0xff]  }
 0x168   :  { %1583 = vmatmul.mubr.msk.bf16.vlgmr.msra.gmra.mxu1 %vm1026_vm0, %v1691_v4  ;;  %v1725_v4 = vmov 0.0  }
 0x169   :  { %1586 = vmatprep.mubr.msk.bf16.mxu1 %vm1026_vm0, %v1692_v59  ;;  %v1168_v59 = vpop.permute.xlu0 %1167 }
 0x170   :  { %1587 = vmatmul.mubr.msk.bf16.gmra.mxu1 %vm1026_vm0, %v1693_v17  ;;  %v1173_v17 = vpop.permute.xlu1 %1172 }
 0x171   :  { %1590 = vmatprep.mubr.msk.bf16.mxu1 %vm1026_vm0, %v1694_v6 }
 0x178   :  { %1591 = vmatmul.mubr.msk.bf16.gmra.mxu1 %vm1026_vm0, %v1695_v0 }
 0x179   :  { %1600 = vmatprep.mubr.msk.bf16.mxu1 %vm1185_vm1, %v1696_v29 }
 0x228   :  { %v1584_v33 = vpop.f32.mrf.mxu1 }
 0x229   :  { %v1088_v19 = vadd.f32 %v1584_v33, %v949_v18  ;;  %v1163_v33 = vpop.permute.xlu1 %1162 }
 0x22a   :  { %v1079_v35 = vpop.f32.mrf.mxu1 }
 0x22b   :  { %v1080_v16 = vadd.f32 %v1079_v35, %v939_v46  ;;  %v1128_v25 = vmax.f32 %v1088_v19, 0.0 }
 0x22c   :  { %v1585_v51 = vpop.f32.mrf.mxu1 }
 0x22d   :  { %v1091_v43 = vadd.f32 %v1585_v51, %v954_v39  ;;  %v1126_v47 = vmax.f32 %v1080_v16, 0.0 }
 0x22e   :  { %v1082_v38 = vpop.f32.mrf.mxu1 }
 0x22f   :  { %v1083_v45 = vadd.f32 %v1082_v38, %v944_v5  ;;  %v1129_v8 = vmax.f32 %v1091_v43, 0.0 }
 0x230   :  { %v1588_v61 = vpop.f32.mrf.mxu1 }
 0x231   :  { %v1104_v40 = vadd.f32 %v1588_v61, %v969_v12  ;;  %v1127_v11 = vmax.f32 %v1083_v45, 0.0  ;;  %v1139_v10 = vmax.f32 %v1128_v25, %v1129_v8  ;;  %v1254_v12 = vlaneseq }
 0x232   :  { %v1095_v63 = vpop.f32.mrf.mxu1 }
 0x233   :  { %v1096_v41 = vadd.f32 %v1095_v63, %v959_v58  ;;  %v1132_v22 = vmax.f32 %v1104_v40, 0.0  ;;  %v1138_v26 = vmax.f32 %v1126_v47, %v1127_v11 }
 0x234   :  { %v1589_v3 = vpop.f32.mrf.mxu1 }
 0x235   :  { %v1107_v2 = vadd.f32 %v1589_v3, %v974_v1  ;;  %v1130_v56 = vmax.f32 %v1096_v41, 0.0  ;;  %v1144_v27 = vpack.c.bf16 %v1139_v10, %v1138_v26  ;;  %v1247_v3 = vld [vmem:[%s2195_s7] sm:$0x1]  ;;  %s1702_s7 = scalar_lea.vmem %s1317_s17, 16 }
 0x236   :  { %v1098_v13 = vpop.f32.mrf.mxu1  ;;  %p1703_p0 = scmp.ne.s32.totalorder %s1317_s17, %s1702_s7  ;;  %p1708_p2 = scmp.lt.s32.totalorder %s1706_s8, %s1702_s7 }
 0x237   :  { %v1099_v55 = vadd.f32 %v1098_v13, %v964_v36  ;;  %v1133_v20 = vmax.f32 %v1107_v2, 0.0  ;;  %v1255_v13 = vshrl.u32 %v1254_v12, 7 }
 0x238   :  { %v1592_v9 = vpop.f32.mrf.mxu1  ;;  %p1709_p3 = por %p1708_p2, %p1707_p1 }
 0x239   :  { %v1120_v44 = vadd.f32 %v1592_v9, %v989_v34  ;;  %v1131_v37 = vmax.f32 %v1099_v55, 0.0  ;;  %v1141_v14 = vmax.f32 %v1132_v22, %v1133_v20  ;;  %v1256_v9 = vsub.s32 0, %v1255_v13 }
 0x23a   :  { %v1111_v54 = vpop.f32.mrf.mxu1  ;;  %p1710_p4 = pnand %p1709_p3, %p1703_p0 }
 0x23b   :  { %v1112_v53 = vadd.f32 %v1111_v54, %v979_v31  ;;  %v1136_v49 = vmax.f32 %v1120_v44, 0.0  ;;  %v1140_v23 = vmax.f32 %v1130_v56, %v1131_v37  ;;  %v1158_v31 = vpop.permute.xlu0 %1157 }
 0x23c   :  { %v1593_v52 = vpop.f32.mrf.mxu1 }
 0x23d   :  { %v1123_v7 = vadd.f32 %v1593_v52, %v994_v32  ;;  %v1134_v21 = vmax.f32 %v1112_v53, 0.0  ;;  %v1145_v62 = vpack.c.bf16 %v1141_v14, %v1140_v23 }
 0x23e   :  { %v1114_v15 = vpop.f32.mrf.mxu1 }
 0x23f   :  { %v1137_v50 = vmax.f32 %v1123_v7, 0.0  ;;  %v1115_v60 = vadd.f32 %v1114_v15, %v984_v30  ;;  %v1252_v5 = vpop.permute.xlu0 %1251 }
 0x240   :  { %v1257_v54 = vrot.slane %v1252_v5, %v1256_v9 }
 0x241   :  { %v1135_v48 = vmax.f32 %v1115_v60, 0.0  ;;  %v1143_v42 = vmax.f32 %v1136_v49, %v1137_v50 }
 0x243   :  { %v1142_v57 = vmax.f32 %v1134_v21, %v1135_v48 }
 0x245   :  { %v1146_v24 = vpack.c.bf16 %v1143_v42, %v1142_v57 }
 0x247   :  { %1594 = vmatprep.subr.bf16.mxu1 %v1146_v24 }
 0x248   :  { %1595 = vmatpush3.bf16.msra.mxu1 %v1146_v24 }
 0x249   :  { %1596 = vmatprep.subr.bf16.mxu1 %v1145_v62 }
 0x24c   :  { %1597 = vmatpush3.bf16.msra.mxu1 %v1145_v62 }
 0x24d   :  { %1598 = vmatprep.subr.bf16.mxu1 %v1144_v27 }
 0x250   :  { %1599 = vmatpush3.bf16.msra.mxu1 %v1144_v27 }
 0x251   :  { %1604 = vmatprep.subr.bf16.mxu1 %v1725_v4 }
 0x253   :  { %1601 = vmatmul.mubr.msk.bf16.vlgmr.msra.gmra.mxu1 %vm1185_vm1, %v1697_v28 }
 0x254   :  { %1608 = vmatprep.mubr.msk.bf16.mxu1 %vm1726_vm2, %v1725_v4 }
 0x313   :  { %v1602_v6 = vpop.f32.mrf.mxu1 }
 0x314   :  { %v1235_v29 = vadd.f32 %v1602_v6, %v1168_v59 }
 0x315   :  { %v1226_v0 = vpop.f32.mrf.mxu1 }
 0x316   :  { %v1243_v35 = vmax.f32 %v1235_v29, 0.0  ;;  %v1227_v51 = vadd.f32 %v1226_v0, %v1158_v31 }
 0x317   :  { %v1603_v30 = vpop.f32.mrf.mxu1 }
 0x318   :  { %v1238_v32 = vadd.f32 %v1603_v30, %v1173_v17  ;;  %v1241_v63 = vmax.f32 %v1227_v51, 0.0 }
 0x319   :  { %v1229_v34 = vpop.f32.mrf.mxu1 }
 0x31a   :  { %v1244_v36 = vmax.f32 %v1238_v32, 0.0  ;;  %v1230_v38 = vadd.f32 %v1229_v34, %v1163_v33 }
 0x31c   :  { %v1246_v58 = vpack.c.bf16 %v1244_v36, %v1243_v35  ;;  %v1242_v61 = vmax.f32 %v1230_v38, 0.0 }
 0x31e   :  { %1605 = vmatpush3.bf16.msra.mxu1 %v1246_v58  ;;  %v1245_v1 = vpack.c.bf16 %v1242_v61, %v1241_v63 }
 0x31f   :  { %1606 = vmatprep.subr.bf16.mxu1 %v1725_v4 }
 0x322   :  { %1607 = vmatpush3.bf16.msra.mxu1 %v1245_v1 }
 0x325   :  { %1609 = vmatmul.mubr.msk.bf16.vlgmr.msra.gmra.mxu1 %vm1258_vm3, %v1247_v3 }
 0x3e5   :  { %v1296_v46 = vpop.f32.mrf.mxu1 }
 0x3e6   :  { %v1297_v55 = vadd.f32 %v1296_v46, %v1257_v54 }
 0x3e7   :  { %v1610_v41 = vpop.f32.mrf.mxu1 }
 0x3e8   :  { %v1401_v52 = vmul.f32 -1.442695, %v1297_v55 }
 0x3e9   :  { %v1299_v2 = vpop.f32.mrf.mxu1 }
 0x3ea   :  { %1698 = vpow2.f32 %v1401_v52 }
 0x3eb   :  { %v1611_v44 = vpop.f32.mrf.mxu1 }
 0x3f7   :  { %v1699_v53 = vpop.eup %1698 }
 0x3f8   :  { %v1305_v7 = vadd.f32 1.0, %v1699_v53 }
 0x3fa   :  { %1700 = vrcp.f32 %v1305_v7 }
 0x407   :  { %v1701_v45 = vpop.eup %1700 }
 0x408   :  { %1309 = vst.msk [vmem:[#allocation3] sm:$0x1] %vm1308_vm4, %v1701_v45 }
 0x409   :  { %1713 = shalt.err (!%p1710_p4)
}
 0x40a   :  { %1319 = dma.vmem_to_hbm [thread:$0]  %s1317_s17, 16, %s2197_s9, [#allocation4]  }
 0x40b   :  { %1722 = dma.done.wait [#allocation4], 16  }
 0x40c   :  { %1723 = vsyncadd [#allocation4], 4294967280 }
 0x40d   :  { %1323 = vsyncpa [#allocation4], 1 }

</bundles_post_ra>
